<compile_context>
chip_gen: v5e
topology: v5e:2x2
jax: 0.10.0
libtpu: 0.0.40
codegen_flags: <defaults>
</compile_context>

<pallas_src>
import functools

import jax
import jax.numpy as jnp
from jax.experimental import pallas as pl
from jax.experimental.pallas import tpu as pltpu

SUB, LANE = 8, 128
# Per-input, per-pipeline-buffer budget.  2 inputs x 2 buffers x 2 MiB = 8 MiB,
# inside every generation's default scoped VMEM (16 MiB v5e, 32 MiB v6e/v7x).
TARGET_BLOCK_BYTES = 2 * 1024 * 1024
MAX_CHAINS = 8                    # independent accumulation chains (VALU ILP)


def _pick_num_chains(block_rows):
    for k in (MAX_CHAINS, 4, 2, 1):
        if block_rows % (k * SUB) == 0:
            return k
    return 1                      # odd tiny block -> colsum fallback in-kernel


def _num_tensorcores_per_chip():
    # Only v7x has 2 TensorCores per chip; default to 1 on any uncertainty.
    try:
        kind = jax.devices()[0].device_kind.lower()
    except Exception:
        return 1
    return 2 if ("v7" in kind or "7x" in kind) else 1


def _adv_loss_kernel(real_ref, fake_ref, out_ref, *, adv_type, block_rows,
                     num_chains, blocks_per_slice, total_blocks,
                     valid_rows_last, two_d_grid):
    if two_d_grid:
        c = pl.program_id(0)            # core slice (CORE_PARALLEL on v7x)
        i = pl.program_id(1)            # sequential block within the slice
        logical_block = c * blocks_per_slice + i
    else:
        i = pl.program_id(0)
        logical_block = i

    @pl.when(i == 0)
    def _():
        out_ref[...] = jnp.zeros_like(out_ref)

    real = real_ref[...]                # (block_rows, 128), teacher, native dtype
    fake = fake_ref[...]                # (block_rows, 128), student, native dtype

    # Element-wise stage in the native dtype (bf16 on v6e/v7x halves VALU work;
    # bf16-ulp rounding before the f32 accumulation is accepted).
    if adv_type == "wgan-gp":
        # -mean(real) + mean(fake) == sum(fake - real) / N
        term = fake - real
    else:  # hinge: mean(relu(1 - real)) + mean(relu(1 + fake))
        one = jnp.asarray(1.0, dtype=real.dtype)
        zero = jnp.asarray(0.0, dtype=real.dtype)
        term = jnp.maximum(one - real, zero) + jnp.maximum(one + fake, zero)

    def accumulate(t):
        if block_rows % (num_chains * SUB) == 0:
            # num_chains independent f32 partial accumulators -> ILP instead of
            # one serial chain of block_rows/8 dependent adds.
            red = t.reshape(-1, num_chains, SUB, LANE).sum(
                axis=0, dtype=jnp.float32)                     # (nc, 8, 128)
            out_ref[...] += red[None]
        else:
            # Tiny / odd-shaped block: fold column sums into chain 0, row 0.
            colsum = jnp.sum(t, axis=0, dtype=jnp.float32).reshape(1, 1, 1, LANE)
            sel = ((jax.lax.broadcasted_iota(
                        jnp.int32, (1, num_chains, SUB, LANE), 1) == 0)
                   & (jax.lax.broadcasted_iota(
                        jnp.int32, (1, num_chains, SUB, LANE), 2) == 0))
            out_ref[...] += jnp.where(sel, colsum, 0.0)

    if valid_rows_last == block_rows:
        # Every block is fully valid: mask-free fast path everywhere.
        accumulate(term)
    else:
        # Only the single ragged last block pays for a mask (one static
        # row-index compare + select); interior blocks stay mask-free.
        is_last = logical_block == (total_blocks - 1)

        @pl.when(jnp.logical_not(is_last))
        def _():
            accumulate(term)

        @pl.when(is_last)
        def _():
            row = jax.lax.broadcasted_iota(jnp.int32, term.shape, 0)
            accumulate(jnp.where(row < valid_rows_last, term,
                                 jnp.zeros_like(term)))


def _launch(real2d, fake2d, *, adv_type, block_rows, num_chains, num_slices,
            total_blocks, valid_rows_last):
    blocks_per_slice = total_blocks // num_slices
    two_d = num_slices > 1

    kernel = functools.partial(
        _adv_loss_kernel, adv_type=adv_type, block_rows=block_rows,
        num_chains=num_chains, blocks_per_slice=blocks_per_slice,
        total_blocks=total_blocks, valid_rows_last=valid_rows_last,
        two_d_grid=two_d)

    if two_d:
        grid = (num_slices, blocks_per_slice)
        in_map = lambda c, i: (c * blocks_per_slice + i, 0)
        out_map = lambda c, i: (c, 0, 0, 0)
        semantics = (pltpu.CORE_PARALLEL, pltpu.ARBITRARY)
    else:
        grid = (total_blocks,)
        in_map = lambda i: (i, 0)
        out_map = lambda i: (0, 0, 0, 0)
        semantics = (pltpu.ARBITRARY,)

    n_elems = real2d.shape[0] * LANE
    cost = pl.CostEstimate(
        flops=4 * n_elems,
        transcendentals=0,
        bytes_accessed=(n_elems * (real2d.dtype.itemsize + fake2d.dtype.itemsize)
                        + num_slices * num_chains * SUB * LANE * 4))

    return pl.pallas_call(
        kernel,
        out_shape=jax.ShapeDtypeStruct((num_slices, num_chains, SUB, LANE),
                                       jnp.float32),
        grid_spec=pltpu.PrefetchScalarGridSpec(
            num_scalar_prefetch=0,
            grid=grid,
            in_specs=[
                pl.BlockSpec((block_rows, LANE), in_map),
                pl.BlockSpec((block_rows, LANE), in_map),
            ],
            out_specs=pl.BlockSpec((1, num_chains, SUB, LANE), out_map),
        ),
        compiler_params=pltpu.CompilerParams(
            dimension_semantics=semantics,
            vmem_limit_bytes=32 * 1024 * 1024),
        cost_estimate=cost,
    )(real2d, fake2d)


def criterion_adv(d_out_S, d_out_T, adv_type, *, block_rows_cap=None):
    """Pallas equivalent of CriterionAdv(adv_type)(d_out_S, d_out_T)."""
    if adv_type != "wgan-gp" and adv_type != "hinge":
        raise ValueError("adv_type should be wgan-gp or hinge")

    d_out_fake = jnp.asarray(d_out_S[0])   # student
    d_out_real = jnp.asarray(d_out_T[0])   # teacher
    assert d_out_fake.shape == d_out_real.shape, (
        "the output dim of D with teacher and student as input differ")

    n = int(d_out_real.size)
    assert n > 0, "empty discriminator output"

    real_flat = d_out_real.reshape(-1)     # free row-major view
    fake_flat = d_out_fake.reshape(-1)

    tail = n % LANE
    n_main = n - tail

    def elem_sum(r, f):
        r = r.astype(jnp.float32)
        f = f.astype(jnp.float32)
        if adv_type == "wgan-gp":
            return jnp.sum(f - r)
        return jnp.sum(jnp.maximum(1.0 - r, 0.0) + jnp.maximum(1.0 + f, 0.0))

    # <=127-element ragged tail handled with plain jnp (no full-array pad copy).
    extra = elem_sum(real_flat[n_main:], fake_flat[n_main:]) if tail \
        else jnp.float32(0.0)

    if n_main == 0:                        # whole input smaller than one lane row
        return extra / n

    if tail:
        real2d = real_flat[:n_main].reshape(-1, LANE)
        fake2d = fake_flat[:n_main].reshape(-1, LANE)
    else:
        real2d = real_flat.reshape(-1, LANE)
        fake2d = fake_flat.reshape(-1, LANE)

    rows = real2d.shape[0]
    itemsize = max(real2d.dtype.itemsize, fake2d.dtype.itemsize)
    max_rows = TARGET_BLOCK_BYTES // (LANE * itemsize)    # f32: 4096, bf16: 8192
    max_rows = max(MAX_CHAINS * SUB,
                   (max_rows // (MAX_CHAINS * SUB)) * (MAX_CHAINS * SUB))
    if block_rows_cap is not None:                        # testing hook
        max_rows = max(SUB, (int(block_rows_cap) // SUB) * SUB)

    block_rows = rows if rows <= max_rows else max_rows
    total_blocks = pl.cdiv(rows, block_rows)
    valid_rows_last = rows - (total_blocks - 1) * block_rows
    num_chains = _pick_num_chains(block_rows)

    # Core split only when the chip has 2 TensorCores (v7x) and the split is
    # exact (no clamped duplicate blocks, no extra masking).
    num_tc = _num_tensorcores_per_chip()
    num_slices = num_tc if (num_tc > 1 and total_blocks >= num_tc
                            and total_blocks % num_tc == 0) else 1

    common = dict(adv_type=adv_type, block_rows=block_rows,
                  num_chains=num_chains, total_blocks=total_blocks,
                  valid_rows_last=valid_rows_last)

    partials = None
    if num_slices > 1:
        try:
            partials = _launch(real2d, fake2d, num_slices=num_slices, **common)
            partials = jax.block_until_ready(partials)
        except Exception:
            partials = None            # fall back to the single-core 1-D grid
    if partials is None:
        partials = _launch(real2d, fake2d, num_slices=1, **common)

    # Tiny final reduction (num_slices*num_chains*8*128 f32) + mean outside.
    return (jnp.sum(partials) + extra) / n


def _reference(d_out_S, d_out_T, adv_type):
    real = jnp.asarray(d_out_T[0], jnp.float32)
    fake = jnp.asarray(d_out_S[0], jnp.float32)
    if adv_type == "wgan-gp":
        return -jnp.mean(real) + jnp.mean(fake)
    return (jnp.mean(jnp.maximum(1.0 - real, 0.0)) +
            jnp.mean(jnp.maximum(1.0 + fake, 0.0)))


if __name__ == "__main__":
    key = jax.random.PRNGKey(0)
    ok = True
    # (shape, dtype, forced block-row cap for testing, tolerance)
    cases = [
        ((2, 4, 16, 16), jnp.float32, None, 1e-5),   # lane-aligned, single block
        ((3, 1, 10, 13), jnp.float32, None, 1e-5),   # ragged tail (jnp tail path)
        ((2, 4, 16, 24), jnp.float32, 16, 1e-5),     # multi-block + masked last block
        ((2, 4, 16, 16), jnp.bfloat16, None, 3e-2),  # bf16 element-wise path
    ]
    for shape, dtype, cap, tol in cases:
        key, k_s, k_t = jax.random.split(key, 3)
        d_out_S = (jax.random.normal(k_s, shape, jnp.float32).astype(dtype),)
        d_out_T = (jax.random.normal(k_t, shape, jnp.float32).astype(dtype),)
        for adv_type in ("wgan-gp", "hinge"):
            got = jax.block_until_ready(
                criterion_adv(d_out_S, d_out_T, adv_type, block_rows_cap=cap))
            want = jax.block_until_ready(_reference(d_out_S, d_out_T, adv_type))
            if not jnp.allclose(got, want, atol=tol, rtol=tol):
                ok = False
                print(f"MISMATCH shape={shape} dtype={jnp.dtype(dtype).name} "
                      f"cap={cap} adv_type={adv_type}: got={got} want={want}")
    if ok:
        print("KERNEL_OK")
</pallas_src>

<mosaic_0001>
module attributes {stable_mosaic.version = 11 : i64} {
  func.func @_adv_loss_kernel(%arg0: i32, %arg1: memref<16x128xf32, #tpu.memory_space<vmem>>, %arg2: memref<16x128xf32, #tpu.memory_space<vmem>>, %arg3: memref<1x2x8x128xf32, #tpu.memory_space<vmem>>) attributes {dimension_semantics = [#tpu.dimension_semantics<arbitrary>], iteration_bounds = array<i64: 1>, scalar_prefetch = 0 : i64, scratch_operands = 0 : i64, tpu.core_type = #tpu.core_type<tc>, window_params = [{transform_indices = @transform_0, window_bounds = array<i64: 16, 128>}, {transform_indices = @transform_1, window_bounds = array<i64: 16, 128>}, {pipeline_mode = #tpu.pipeline_mode<synchronous>, transform_indices = @transform_2, window_bounds = array<i64: 1, 2, 8, 128>}]} {
    %c0_i32 = arith.constant 0 : i32
    %0 = arith.cmpi eq, %arg0, %c0_i32 : i32
    %1 = arith.extui %0 : i1 to i32
    %c0_i32_0 = arith.constant 0 : i32
    %2 = arith.cmpi ne, %1, %c0_i32_0 : i32
    scf.if %2 {
      %cst_12 = arith.constant 0.000000e+00 : f32
      %12 = vector.broadcast %cst_12 : f32 to vector<1x2x8x128xf32>
      %c0_13 = arith.constant 0 : index
      %c0_14 = arith.constant 0 : index
      %c0_15 = arith.constant 0 : index
      %c0_16 = arith.constant 0 : index
      %13 = vector.load %arg3[%c0_13, %c0_14, %c0_15, %c0_16] : memref<1x2x8x128xf32, #tpu.memory_space<vmem>>, vector<1x2x8x128xf32>
      tpu.vector_store %arg3[%c0_13, %c0_14, %c0_15, %c0_16], %12 {strides = array<i32>} : memref<1x2x8x128xf32, #tpu.memory_space<vmem>>, vector<1x2x8x128xf32>,
    } else {
    }
    %c0 = arith.constant 0 : index
    %c0_1 = arith.constant 0 : index
    %3 = vector.load %arg1[%c0, %c0_1] : memref<16x128xf32, #tpu.memory_space<vmem>>, vector<16x128xf32>
    %c0_2 = arith.constant 0 : index
    %c0_3 = arith.constant 0 : index
    %4 = vector.load %arg2[%c0_2, %c0_3] : memref<16x128xf32, #tpu.memory_space<vmem>>, vector<16x128xf32>
    %5 = arith.subf %4, %3 : vector<16x128xf32>
    %6 = vector.shape_cast %5 : vector<16x128xf32> to vector<1x2x8x128xf32>
    %cst = arith.constant dense<0.000000e+00> : vector<2x8x128xf32>
    %7 = vector.multi_reduction <add>, %6, %cst [0] : vector<1x2x8x128xf32> to vector<2x8x128xf32>
    %c0_4 = arith.constant 0 : index
    %c0_5 = arith.constant 0 : index
    %c0_6 = arith.constant 0 : index
    %c0_7 = arith.constant 0 : index
    %8 = vector.load %arg3[%c0_4, %c0_5, %c0_6, %c0_7] : memref<1x2x8x128xf32, #tpu.memory_space<vmem>>, vector<1x2x8x128xf32>
    %9 = vector.shape_cast %7 : vector<2x8x128xf32> to vector<1x2x8x128xf32>
    %10 = arith.addf %8, %9 : vector<1x2x8x128xf32>
    %c0_8 = arith.constant 0 : index
    %c0_9 = arith.constant 0 : index
    %c0_10 = arith.constant 0 : index
    %c0_11 = arith.constant 0 : index
    %11 = vector.load %arg3[%c0_8, %c0_9, %c0_10, %c0_11] : memref<1x2x8x128xf32, #tpu.memory_space<vmem>>, vector<1x2x8x128xf32>
    tpu.vector_store %arg3[%c0_8, %c0_9, %c0_10, %c0_11], %10 {strides = array<i32>} : memref<1x2x8x128xf32, #tpu.memory_space<vmem>>, vector<1x2x8x128xf32>,
    return
  }
  func.func @transform_0(%arg0: i32) -> (i32, i32) {
    %c0_i32 = arith.constant 0 : i32
    %c0_i32_0 = arith.constant 0 : i32
    return %arg0, %c0_i32 : i32, i32
  }
  func.func @transform_1(%arg0: i32) -> (i32, i32) {
    %c0_i32 = arith.constant 0 : i32
    %c0_i32_0 = arith.constant 0 : i32
    return %arg0, %c0_i32 : i32, i32
  }
  func.func @transform_2(%arg0: i32) -> (i32, i32, i32, i32) {
    %c0_i32 = arith.constant 0 : i32
    %c0_i32_0 = arith.constant 0 : i32
    %c0_i32_1 = arith.constant 0 : i32
    %c0_i32_2 = arith.constant 0 : i32
    %c0_i32_3 = arith.constant 0 : i32
    return %c0_i32, %c0_i32_0, %c0_i32_1, %c0_i32_2 : i32, i32, i32, i32
  }
}

</mosaic_0001>

<bundles_post_ra>
// kernel: tpu_custom_call.1
= control target key start
LH: loop header
LB: loop body
LE: loop exit
PB: predicated region body
PF: predicated region fallthrough
CT: control target
= control target key end

     0   :  { %7 = vsyncpa [#allocation3], 0  ;;  %s197_s0 = inlined_call_operand.hbm [shape: f32[16,128], index: 0, kind: input, shape index: {}]   ;;  %s198_s1 = inlined_call_operand.hbm [shape: f32[16,128], index: 1, kind: input, shape index: {}]   ;;  %s199_s2 = inlined_call_operand.hbm [shape: f32[1,2,8,128], index: 2, kind: output, shape index: {}]  }
   0x1   :  { %8 = vsyncpa [#allocation6], 0 }
   0x2   :  { %9 = vsyncpa [#allocation4], 0  ;;  %s14_s11 = sshll.u32 %s197_s0, 4  ;;  %s168_s12 = smov [#allocation2]   ;;  %s15_s11 = int_to_ptr.hbm [resolvable:$true] %s14_s11 }
   0x3   :  { %s16_s13 = sshll.u32 %s168_s12, 4  ;;  %s27_s16 = sshll.u32 %s198_s1, 4  ;;  %s17_s13 = int_to_ptr.vmem [resolvable:$true] %s16_s13  ;;  %s28_s16 = int_to_ptr.hbm [resolvable:$true] %s27_s16 }
   0x4   :  { %s169_s17 = smov 128   ;;  %s170_s18 = smov 8  }
   0x5   :  { %22 = dma.hbm_to_vmem [thread:$0]  %s15_s11, 256, %s17_s13, [#allocation3], %s169_s17, %s169_s17, %s170_s18  }
   0x6   :  { %s171_s19 = smov [#allocation5]  }
   0x7   :  { %s29_s20 = sshll.u32 %s171_s19, 4  ;;  %s30_s20 = int_to_ptr.vmem [resolvable:$true] %s29_s20 }
   0x8   :  { %35 = dma.hbm_to_vmem [thread:$0]  %s28_s16, 256, %s30_s20, [#allocation6], %s169_s17, %s169_s17, %s170_s18  }
   0x9   :  { %162 = dma.done.wait [#allocation3], 256  }
   0xa   :  { %163 = vsyncadd [#allocation3], 4294967040 }
   0xb   :  { %164 = dma.done.wait [#allocation6], 256  }
   0xc   :  { %165 = vsyncadd [#allocation6], 4294967040  ;;  %v50_v0 = vld [vmem:[#allocation2] sm:$0xff]  ;;  %v52_v1 = vld [vmem:[#allocation5] sm:$0xff]  ;;  %s172_s0 = smov [#allocation7]   ;;  %s70_s23 = sshll.u32 %s199_s2, 4  ;;  %s71_s23 = int_to_ptr.hbm [resolvable:$true] %s70_s23 }
   0xd   :  { %v51_v2 = vld [vmem:[#allocation2 + $0x8] sm:$0xff]  ;;  %v54_v3 = vsub.f32 %v52_v1, %v50_v0  ;;  %v53_v4 = vld [vmem:[#allocation5 + $0x8] sm:$0xff]  ;;  %s68_s21 = sshll.u32 %s172_s0, 4  ;;  %s69_s21 = int_to_ptr.vmem [resolvable:$true] %s68_s21 }
   0xe   :  { %v55_v5 = vsub.f32 %v53_v4, %v51_v2 }
   0xf   :  { %62 = vst [vmem:[#allocation7] sm:$0xff] %v54_v3 }
  0x10   :  { %63 = vst [vmem:[#allocation7 + $0x8] sm:$0xff] %v55_v5 }
  0x11   :  { %76 = dma.vmem_to_hbm [thread:$0]  %s69_s21, 256, %s71_s23, [#allocation4], %s169_s17, %s169_s17, %s170_s18  }
  0x12   :  { %166 = dma.done.wait [#allocation4], 256  }
  0x13   :  { %167 = vsyncadd [#allocation4], 4294967040 }
  0x14   :  { %81 = vsyncpa [#allocation3], 1 }
  0x15   :  { %82 = vsyncpa [#allocation6], 1 }
  0x16   :  { %83 = vsyncpa [#allocation4], 1 }

</bundles_post_ra>
